<compile_context>
chip_gen: v7x
topology: tpu7x:2x2x1
jax: 0.10.0
libtpu: 0.0.40
codegen_flags: <defaults>
</compile_context>

<pallas_src>
import math

import jax
import jax.numpy as jnp
from jax.experimental import pallas as pl
from jax.experimental.pallas import tpu as pltpu


_SMALL_BYTES = 1 << 20          # below this: single-program whole-array block
_DEFAULT_SLAB_BYTES = 8 << 20   # target bytes per pipelined block
_VMEM_LIMIT_CAP = 48 << 20      # stay well under v7x's 64 MiB physical VMEM


def _vmem_limit(block_bytes):
    # ~2x double-buffered input + 2x output + relayout temporaries.
    return int(min(max(6 * block_bytes, 32 << 20), _VMEM_LIMIT_CAP))


def _copy_kernel(x_ref, o_ref):
    # Pure copy: the permute is expressed by the BlockSpec index maps.
    o_ref[...] = x_ref[...]


def _make_transpose_kernel(perm):
    def kernel(x_ref, o_ref):
        o_ref[...] = jnp.transpose(x_ref[...], perm)
    return kernel


def _coalesce_axes(shape, dims):
    """Merge runs of input axes that stay adjacent & in-order in the output."""
    runs = []
    for d in dims:
        if runs and d == runs[-1][-1] + 1:
            runs[-1].append(d)
        else:
            runs.append([d])
    order = sorted(range(len(runs)), key=lambda r: runs[r][0])
    new_shape = tuple(int(math.prod(shape[a] for a in runs[r])) for r in order)
    pos = {r: p for p, r in enumerate(order)}
    new_dims = tuple(pos[r] for r in range(len(runs)))
    return new_shape, new_dims


def _pick_tile(extent, unit, budget_units):
    """Largest multiple of `unit` dividing `extent` that is <= budget_units."""
    if extent <= unit or extent % unit:
        return extent
    tile = min(extent, max(unit, (budget_units // unit) * unit))
    while extent % tile:
        tile -= unit
    return int(tile)


def _leading_permute_copy(x, dims, out_shape, slab_bytes_target):
    """dims leaves the two minor axes in place -> pure index-map DMA copy."""
    ndim = x.ndim
    n_lead = ndim - 2
    s2, s1 = int(x.shape[-2]), int(x.shape[-1])
    itemsize = jnp.dtype(x.dtype).itemsize
    pack = max(8, 32 // itemsize)   # sublane packing: f32 -> 8, bf16 -> 16, i8 -> 32

    # Tile the second-minor dim when a full (s2, s1) slab blows the budget.
    tile2 = s2
    if s2 * s1 * itemsize > slab_bytes_target:
        tile2 = _pick_tile(s2, pack, max(pack, slab_bytes_target // (s1 * itemsize)))
    # If still too large (s2 not pack-divisible, or s1 huge) also tile the
    # minor axis in multiples of 128 (keeps DMA lane-dense and blocks legal).
    tile1 = s1
    if tile2 * s1 * itemsize > slab_bytes_target:
        tile1 = _pick_tile(s1, 128, max(128, slab_bytes_target // (tile2 * itemsize)))

    grid = (tuple(int(out_shape[j]) for j in range(n_lead))
            + (s2 // tile2, s1 // tile1))
    block = (1,) * n_lead + (tile2, tile1)

    def in_index(*g):
        idx = [0] * ndim
        for j in range(n_lead):
            idx[dims[j]] = g[j]
        idx[ndim - 2] = g[n_lead]
        idx[ndim - 1] = g[n_lead + 1]
        return tuple(idx)

    def out_index(*g):
        return tuple(g[:n_lead]) + (g[n_lead], g[n_lead + 1])

    return pl.pallas_call(
        _copy_kernel,
        out_shape=jax.ShapeDtypeStruct(out_shape, x.dtype),
        grid=grid,
        in_specs=[pl.BlockSpec(block, in_index)],
        out_specs=pl.BlockSpec(block, out_index),
        compiler_params=pltpu.CompilerParams(
            dimension_semantics=("parallel",) * len(grid),
            vmem_limit_bytes=_vmem_limit(tile2 * tile1 * itemsize),
        ),
    )(x)


def _general_permute(x, dims, out_shape, slab_bytes_target):
    """Permute that moves a minor axis: per-block in-kernel transpose."""
    ndim = x.ndim
    itemsize = jnp.dtype(x.dtype).itemsize
    total_bytes = int(x.size) * itemsize

    # Grid over leading output axes whose source is NOT a minor input axis, so
    # per-block minor input dims stay full-extent (TPU (8,128) tiling rule).
    n_grid = 0
    if total_bytes > _SMALL_BYTES:
        while n_grid < ndim - 2 and dims[n_grid] < ndim - 2:
            n_grid += 1

    in_block = [int(s) for s in x.shape]
    for j in range(n_grid):
        in_block[dims[j]] = 1

    # If a block is still too large, additionally tile the input minor axis in
    # multiples of 128 (extra parallel grid axis -> also helps v7x's 2 TCs).
    s_last = int(x.shape[-1])
    tile_minor = s_last
    block_bytes = math.prod(in_block) * itemsize
    if block_bytes > slab_bytes_target and s_last > 128 and s_last % 128 == 0:
        per_unit = block_bytes // s_last
        tile_minor = _pick_tile(s_last, 128, max(128, slab_bytes_target // per_unit))
    in_block[-1] = tile_minor
    in_block = tuple(in_block)
    block_bytes = math.prod(in_block) * itemsize
    # TODO(synk): blocks can still exceed the VMEM budget when the minor axis
    # is not 128-divisible or a single non-grid axis is huge; split further.
    # TODO(synk): for permutes that move a narrow input axis to the minor
    # position (NCHW->NHWC with small C), a lane-dense collapsed (N,H,W*C)
    # output needs an in-kernel minor-dim reshape / lane-strided store that
    # Mosaic may reject; left unimplemented to keep the kernel robust.

    p_minor = dims.index(ndim - 1)   # output position of the input minor axis
    out_block = [1] * n_grid + [int(out_shape[j]) for j in range(n_grid, ndim)]
    out_block[p_minor] = tile_minor
    out_block = tuple(out_block)

    grid = tuple(int(out_shape[j]) for j in range(n_grid)) + (s_last // tile_minor,)

    def in_index(*g):
        idx = [0] * ndim
        for j in range(n_grid):
            idx[dims[j]] = g[j]
        idx[ndim - 1] = g[n_grid]
        return tuple(idx)

    def out_index(*g):
        idx = list(g[:n_grid]) + [0] * (ndim - n_grid)
        idx[p_minor] = g[n_grid]
        return tuple(idx)

    return pl.pallas_call(
        _make_transpose_kernel(dims),
        out_shape=jax.ShapeDtypeStruct(out_shape, x.dtype),
        grid=grid,
        in_specs=[pl.BlockSpec(in_block, in_index)],
        out_specs=pl.BlockSpec(out_block, out_index),
        compiler_params=pltpu.CompilerParams(
            dimension_semantics=("parallel",) * len(grid),
            vmem_limit_bytes=_vmem_limit(block_bytes),
        ),
    )(x)


def pallas_permute(x, dims, *, slab_bytes_target=_DEFAULT_SLAB_BYTES):
    """Pallas equivalent of torch Tensor.permute(*dims)."""
    ndim = x.ndim
    dims = tuple(int(d) % ndim for d in dims)
    if sorted(dims) != list(range(ndim)):
        raise ValueError("dims must be a permutation of the input axes")
    if dims == tuple(range(ndim)):
        return x
    out_shape = tuple(int(x.shape[d]) for d in dims)

    # Fast path: the two minor axes are untouched -> pure index-map DMA copy.
    if ndim >= 3 and dims[-2] == ndim - 2 and dims[-1] == ndim - 1:
        return _leading_permute_copy(x, dims, out_shape, slab_bytes_target)

    # General path: coalesce adjacent axes that remain adjacent (metadata-only
    # reshapes), then relayout the remaining rank-reduced permute in-kernel.
    c_shape, c_dims = _coalesce_axes(tuple(int(s) for s in x.shape), dims)
    if c_dims == tuple(range(len(c_dims))):       # degenerate: pure reshape
        return x.reshape(out_shape)
    c_out_shape = tuple(c_shape[d] for d in c_dims)
    xc = x.reshape(c_shape) if c_shape != tuple(x.shape) else x
    yc = _general_permute(xc, c_dims, c_out_shape, slab_bytes_target)
    return yc if c_out_shape == out_shape else yc.reshape(out_shape)


class Permute:
    """Pallas port of torchelie.nn.reshape.Permute (no parameters)."""

    def __init__(self, *dims):
        self.dims = dims

    def __call__(self, x):
        return pallas_permute(x, self.dims)


if __name__ == "__main__":
    key = jax.random.PRNGKey(0)

    # Primary demo: NCHW feature map, NCHW -> NHWC (matches the torch module).
    x = jax.random.normal(key, (2, 4, 16, 16), dtype=jnp.float32)
    out = Permute(0, 2, 3, 1)(x)
    out = jax.block_until_ready(out)
    ref = jnp.transpose(x, (0, 2, 3, 1))
    assert out.shape == (2, 16, 16, 4)
    assert out.dtype == x.dtype
    assert jnp.array_equal(out, ref)

    # Pure-copy (index-map only) path: permutation of leading axes only.
    out2 = jax.block_until_ready(Permute(1, 0, 2, 3)(x))
    assert jnp.array_equal(out2, jnp.transpose(x, (1, 0, 2, 3)))

    # Inverse permute (NHWC -> NCHW): coalescing yields a lane-dense output.
    xh = jax.random.normal(jax.random.fold_in(key, 1), (2, 16, 16, 4), jnp.float32)
    out3 = jax.block_until_ready(Permute(0, 3, 1, 2)(xh))
    assert jnp.array_equal(out3, jnp.transpose(xh, (0, 3, 1, 2)))

    # Gridded + minor-tiled general path (exercised with a small slab budget).
    xb = jax.random.normal(jax.random.fold_in(key, 2), (2, 8, 128, 256), jnp.float32)
    out4 = pallas_permute(xb, (0, 2, 3, 1), slab_bytes_target=256 * 1024)
    out4 = jax.block_until_ready(out4)
    assert jnp.array_equal(out4, jnp.transpose(xb, (0, 2, 3, 1)))

    # Copy path with both minor axes tiled (small slab budget forces it).
    xc = jax.random.normal(jax.random.fold_in(key, 3), (3, 2, 64, 512), jnp.float32)
    out5 = pallas_permute(xc, (1, 0, 2, 3), slab_bytes_target=32 * 1024)
    out5 = jax.block_until_ready(out5)
    assert jnp.array_equal(out5, jnp.transpose(xc, (1, 0, 2, 3)))

    # Identity permute is a no-op.
    assert Permute(0, 1, 2, 3)(x) is x

    print("KERNEL_OK")
</pallas_src>

<mosaic_0001>
module attributes {stable_mosaic.version = 11 : i64} {
  func.func @kernel(%arg0: i32, %arg1: memref<2x4x256xf32, #tpu.memory_space<vmem>>, %arg2: memref<2x256x4xf32, #tpu.memory_space<vmem>>) attributes {dimension_semantics = [#tpu.dimension_semantics<parallel>], iteration_bounds = array<i64: 1>, scalar_prefetch = 0 : i64, scratch_operands = 0 : i64, tpu.core_type = #tpu.core_type<tc>, window_params = [{transform_indices = @transform_0, window_bounds = array<i64: 2, 4, 256>}, {transform_indices = @transform_1, window_bounds = array<i64: 2, 256, 4>}]} {
    %c0 = arith.constant 0 : index
    %c0_0 = arith.constant 0 : index
    %c0_1 = arith.constant 0 : index
    %0 = vector.load %arg1[%c0, %c0_0, %c0_1] : memref<2x4x256xf32, #tpu.memory_space<vmem>>, vector<2x4x256xf32>
    %1 = tpu.transpose %0, [0, 2, 1] : vector<2x4x256xf32> -> vector<2x256x4xf32>
    %c0_2 = arith.constant 0 : index
    %c0_3 = arith.constant 0 : index
    %c0_4 = arith.constant 0 : index
    %2 = vector.load %arg2[%c0_2, %c0_3, %c0_4] : memref<2x256x4xf32, #tpu.memory_space<vmem>>, vector<2x256x4xf32>
    tpu.vector_store %arg2[%c0_2, %c0_3, %c0_4], %1 {strides = array<i32>} : memref<2x256x4xf32, #tpu.memory_space<vmem>>, vector<2x256x4xf32>,
    return
  }
  func.func @transform_0(%arg0: i32) -> (i32, i32, i32) {
    %c0_i32 = arith.constant 0 : i32
    %c0_i32_0 = arith.constant 0 : i32
    %c0_i32_1 = arith.constant 0 : i32
    return %c0_i32, %c0_i32_0, %arg0 : i32, i32, i32
  }
  func.func @transform_1(%arg0: i32) -> (i32, i32, i32) {
    %c0_i32 = arith.constant 0 : i32
    %c0_i32_0 = arith.constant 0 : i32
    %c0_i32_1 = arith.constant 0 : i32
    return %c0_i32, %arg0, %c0_i32_0 : i32, i32, i32
  }
}

</mosaic_0001>

<bundles_post_ra>
// kernel: tpu_custom_call.1
= control target key start
LH: loop header
LB: loop body
LE: loop exit
PB: predicated region body
PF: predicated region fallthrough
CT: control target
= control target key end

     0   :  { %6 = vsyncpa [#allocation3], 0  ;;  %s258_s6 = smov [#allocation2]   ;;  %s539_s0 = inlined_call_operand.hbm [shape: f32[2,4,256], index: 0, kind: input, shape index: {}]   ;;  %s540_s1 = inlined_call_operand.vmem [shape: f32[2,256,4], index: 1, kind: output, shape index: {}]  }
   0x1   :  { %s12_s7 = sshll.u32 %s258_s6, 4  ;;  %s234_s10 = scalar_lea.hbm %s539_s0, 256  ;;  %s13_s7 = int_to_ptr.vmem [resolvable:$true] %s12_s7 }
   0x2   :  { %p235_p0 = scmp.ne.s32.totalorder %s539_s0, %s234_s10  ;;  %p238_p1 = scmp.lt.u32.totalorder %s234_s10, %s539_s0 }
   0x4   :  { %p240_p2 = pnand %p238_p1, %p235_p0 }
   0x6   :  { %243 = shalt.err (!%p240_p2)
}
   0x7   :  { %s244_s15 = scalar_lea.vmem %s13_s7, 256  ;;  %p249_p4 = scmp.lt.s32.totalorder %s13_s7, %s13_s7 }
   0x8   :  { %p245_p3 = scmp.ne.s32.totalorder %s13_s7, %s244_s15  ;;  %p250_p5 = scmp.lt.s32.totalorder %s244_s15, %s244_s15 }
   0xa   :  { %p251_p6 = por %p250_p5, %p249_p4 }
   0xc   :  { %p252_p7 = pnand %p251_p6, %p245_p3 }
   0xe   :  { %255 = shalt.err (!%p252_p7)
}
   0xf   :  { %s259_s16 = smov 128   ;;  %s260_s17 = smov 8  }
  0x10   :  { %18 = dma.hbm_to_vmem [thread:$0]  %s539_s0, 256, %s13_s7, [#allocation3], %s259_s16, %s259_s16, %s260_s17  }
  0x11   :  { %256 = dma.done.wait [#allocation3], 256  }
  0x12   :  { %257 = vsyncadd [#allocation3], 4294967040  ;;  %v23_v0 = vld [vmem:[#allocation2 + $0x8] sm:$0xff]  ;;  %v22_v1 = vld [vmem:[#allocation2] sm:$0xff]  ;;  %vm158_vm0 = vcmask 31744  }
  0x13   :  { %94 = vxpose.xlu1.b32.start.end [1/1] (short) %v23_v0, 128  ;;  %30 = vxpose.xlu0.b32.start.end [1/1] (short) %v22_v1, 128  ;;  %v27_v2 = vcombine.high %v23_v0, %v23_v0  ;;  %v26_v3 = vcombine.high %v22_v1, %v22_v1 }
  0x50   :  { %126 = vxpose.xlu1.b32.start.end [1/1] (short) %v27_v2, 128  ;;  %62 = vxpose.xlu0.b32.start.end [1/1] (short) %v26_v3, 128 }
  0x93   :  { %v110_v4 = vpop.trf.xlu1  ;;  %v46_v5 = vpop.trf.xlu0 }
  0x94   :  { %191 = vst.msk [vmem:[%s540_s1 + $0x100] sm:$0xff] %vm158_vm0, %v110_v4  ;;  %159 = vst.msk [vmem:[%s540_s1] sm:$0xff] %vm158_vm0, %v46_v5 }
  0x97   :  { %v111_v6 = vpop.trf.xlu1  ;;  %v47_v7 = vpop.trf.xlu0 }
  0x98   :  { %192 = vst.msk [vmem:[%s540_s1 + $0x108] sm:$0xff] %vm158_vm0, %v111_v6  ;;  %160 = vst.msk [vmem:[%s540_s1 + $0x8] sm:$0xff] %vm158_vm0, %v47_v7 }
  0x9b   :  { %v112_v8 = vpop.trf.xlu1  ;;  %v48_v9 = vpop.trf.xlu0 }
  0x9c   :  { %193 = vst.msk [vmem:[%s540_s1 + $0x110] sm:$0xff] %vm158_vm0, %v112_v8  ;;  %161 = vst.msk [vmem:[%s540_s1 + $0x10] sm:$0xff] %vm158_vm0, %v48_v9 }
  0x9f   :  { %v113_v10 = vpop.trf.xlu1  ;;  %v49_v11 = vpop.trf.xlu0 }
  0xa0   :  { %194 = vst.msk [vmem:[%s540_s1 + $0x118] sm:$0xff] %vm158_vm0, %v113_v10  ;;  %162 = vst.msk [vmem:[%s540_s1 + $0x18] sm:$0xff] %vm158_vm0, %v49_v11 }
  0xa3   :  { %v114_v12 = vpop.trf.xlu1  ;;  %v50_v13 = vpop.trf.xlu0 }
  0xa4   :  { %195 = vst.msk [vmem:[%s540_s1 + $0x120] sm:$0xff] %vm158_vm0, %v114_v12  ;;  %163 = vst.msk [vmem:[%s540_s1 + $0x20] sm:$0xff] %vm158_vm0, %v50_v13 }
  0xa7   :  { %v115_v14 = vpop.trf.xlu1  ;;  %v51_v15 = vpop.trf.xlu0 }
  0xa8   :  { %196 = vst.msk [vmem:[%s540_s1 + $0x128] sm:$0xff] %vm158_vm0, %v115_v14  ;;  %164 = vst.msk [vmem:[%s540_s1 + $0x28] sm:$0xff] %vm158_vm0, %v51_v15 }
  0xab   :  { %v116_v16 = vpop.trf.xlu1  ;;  %v52_v17 = vpop.trf.xlu0 }
  0xac   :  { %197 = vst.msk [vmem:[%s540_s1 + $0x130] sm:$0xff] %vm158_vm0, %v116_v16  ;;  %165 = vst.msk [vmem:[%s540_s1 + $0x30] sm:$0xff] %vm158_vm0, %v52_v17 }
  0xaf   :  { %v117_v18 = vpop.trf.xlu1  ;;  %v53_v19 = vpop.trf.xlu0 }
  0xb0   :  { %198 = vst.msk [vmem:[%s540_s1 + $0x138] sm:$0xff] %vm158_vm0, %v117_v18  ;;  %166 = vst.msk [vmem:[%s540_s1 + $0x38] sm:$0xff] %vm158_vm0, %v53_v19 }
  0xb3   :  { %v118_v20 = vpop.trf.xlu1  ;;  %v54_v21 = vpop.trf.xlu0 }
  0xb4   :  { %199 = vst.msk [vmem:[%s540_s1 + $0x140] sm:$0xff] %vm158_vm0, %v118_v20  ;;  %167 = vst.msk [vmem:[%s540_s1 + $0x40] sm:$0xff] %vm158_vm0, %v54_v21 }
  0xb7   :  { %v119_v22 = vpop.trf.xlu1  ;;  %v55_v23 = vpop.trf.xlu0 }
  0xb8   :  { %200 = vst.msk [vmem:[%s540_s1 + $0x148] sm:$0xff] %vm158_vm0, %v119_v22  ;;  %168 = vst.msk [vmem:[%s540_s1 + $0x48] sm:$0xff] %vm158_vm0, %v55_v23 }
  0xbb   :  { %v120_v24 = vpop.trf.xlu1  ;;  %v56_v25 = vpop.trf.xlu0 }
  0xbc   :  { %201 = vst.msk [vmem:[%s540_s1 + $0x150] sm:$0xff] %vm158_vm0, %v120_v24  ;;  %169 = vst.msk [vmem:[%s540_s1 + $0x50] sm:$0xff] %vm158_vm0, %v56_v25 }
  0xbf   :  { %v121_v26 = vpop.trf.xlu1  ;;  %v57_v27 = vpop.trf.xlu0 }
  0xc0   :  { %202 = vst.msk [vmem:[%s540_s1 + $0x158] sm:$0xff] %vm158_vm0, %v121_v26  ;;  %170 = vst.msk [vmem:[%s540_s1 + $0x58] sm:$0xff] %vm158_vm0, %v57_v27 }
  0xc3   :  { %v122_v28 = vpop.trf.xlu1  ;;  %v58_v29 = vpop.trf.xlu0 }
  0xc4   :  { %203 = vst.msk [vmem:[%s540_s1 + $0x160] sm:$0xff] %vm158_vm0, %v122_v28  ;;  %171 = vst.msk [vmem:[%s540_s1 + $0x60] sm:$0xff] %vm158_vm0, %v58_v29 }
  0xc7   :  { %v123_v30 = vpop.trf.xlu1  ;;  %v59_v31 = vpop.trf.xlu0 }
  0xc8   :  { %204 = vst.msk [vmem:[%s540_s1 + $0x168] sm:$0xff] %vm158_vm0, %v123_v30  ;;  %172 = vst.msk [vmem:[%s540_s1 + $0x68] sm:$0xff] %vm158_vm0, %v59_v31 }
  0xcb   :  { %v124_v32 = vpop.trf.xlu1  ;;  %v60_v33 = vpop.trf.xlu0 }
  0xcc   :  { %205 = vst.msk [vmem:[%s540_s1 + $0x170] sm:$0xff] %vm158_vm0, %v124_v32  ;;  %173 = vst.msk [vmem:[%s540_s1 + $0x70] sm:$0xff] %vm158_vm0, %v60_v33 }
  0xcf   :  { %v125_v34 = vpop.trf.xlu1  ;;  %v61_v35 = vpop.trf.xlu0 }
  0xd0   :  { %206 = vst.msk [vmem:[%s540_s1 + $0x178] sm:$0xff] %vm158_vm0, %v125_v34  ;;  %174 = vst.msk [vmem:[%s540_s1 + $0x78] sm:$0xff] %vm158_vm0, %v61_v35 }
  0xd3   :  { %v142_v36 = vpop.trf.xlu1  ;;  %v78_v37 = vpop.trf.xlu0 }
  0xd4   :  { %207 = vst.msk [vmem:[%s540_s1 + $0x180] sm:$0xff] %vm158_vm0, %v142_v36  ;;  %175 = vst.msk [vmem:[%s540_s1 + $0x80] sm:$0xff] %vm158_vm0, %v78_v37 }
  0xd7   :  { %v143_v38 = vpop.trf.xlu1  ;;  %v79_v39 = vpop.trf.xlu0 }
  0xd8   :  { %208 = vst.msk [vmem:[%s540_s1 + $0x188] sm:$0xff] %vm158_vm0, %v143_v38  ;;  %176 = vst.msk [vmem:[%s540_s1 + $0x88] sm:$0xff] %vm158_vm0, %v79_v39 }
  0xdb   :  { %v144_v40 = vpop.trf.xlu1  ;;  %v80_v41 = vpop.trf.xlu0 }
  0xdc   :  { %209 = vst.msk [vmem:[%s540_s1 + $0x190] sm:$0xff] %vm158_vm0, %v144_v40  ;;  %177 = vst.msk [vmem:[%s540_s1 + $0x90] sm:$0xff] %vm158_vm0, %v80_v41 }
  0xdf   :  { %v145_v42 = vpop.trf.xlu1  ;;  %v81_v43 = vpop.trf.xlu0 }
  0xe0   :  { %210 = vst.msk [vmem:[%s540_s1 + $0x198] sm:$0xff] %vm158_vm0, %v145_v42  ;;  %178 = vst.msk [vmem:[%s540_s1 + $0x98] sm:$0xff] %vm158_vm0, %v81_v43 }
  0xe3   :  { %v146_v44 = vpop.trf.xlu1  ;;  %v82_v45 = vpop.trf.xlu0 }
  0xe4   :  { %211 = vst.msk [vmem:[%s540_s1 + $0x1a0] sm:$0xff] %vm158_vm0, %v146_v44  ;;  %179 = vst.msk [vmem:[%s540_s1 + $0xa0] sm:$0xff] %vm158_vm0, %v82_v45 }
  0xe7   :  { %v147_v46 = vpop.trf.xlu1  ;;  %v83_v47 = vpop.trf.xlu0 }
  0xe8   :  { %212 = vst.msk [vmem:[%s540_s1 + $0x1a8] sm:$0xff] %vm158_vm0, %v147_v46  ;;  %180 = vst.msk [vmem:[%s540_s1 + $0xa8] sm:$0xff] %vm158_vm0, %v83_v47 }
  0xeb   :  { %v148_v48 = vpop.trf.xlu1  ;;  %v84_v49 = vpop.trf.xlu0 }
  0xec   :  { %213 = vst.msk [vmem:[%s540_s1 + $0x1b0] sm:$0xff] %vm158_vm0, %v148_v48  ;;  %181 = vst.msk [vmem:[%s540_s1 + $0xb0] sm:$0xff] %vm158_vm0, %v84_v49 }
  0xef   :  { %v149_v50 = vpop.trf.xlu1  ;;  %v85_v51 = vpop.trf.xlu0 }
  0xf0   :  { %214 = vst.msk [vmem:[%s540_s1 + $0x1b8] sm:$0xff] %vm158_vm0, %v149_v50  ;;  %182 = vst.msk [vmem:[%s540_s1 + $0xb8] sm:$0xff] %vm158_vm0, %v85_v51 }
  0xf3   :  { %v150_v52 = vpop.trf.xlu1  ;;  %v86_v53 = vpop.trf.xlu0 }
  0xf4   :  { %215 = vst.msk [vmem:[%s540_s1 + $0x1c0] sm:$0xff] %vm158_vm0, %v150_v52  ;;  %183 = vst.msk [vmem:[%s540_s1 + $0xc0] sm:$0xff] %vm158_vm0, %v86_v53 }
  0xf7   :  { %v151_v54 = vpop.trf.xlu1  ;;  %v87_v55 = vpop.trf.xlu0 }
  0xf8   :  { %216 = vst.msk [vmem:[%s540_s1 + $0x1c8] sm:$0xff] %vm158_vm0, %v151_v54  ;;  %184 = vst.msk [vmem:[%s540_s1 + $0xc8] sm:$0xff] %vm158_vm0, %v87_v55 }
  0xfb   :  { %v152_v56 = vpop.trf.xlu1  ;;  %v88_v57 = vpop.trf.xlu0 }
  0xfc   :  { %217 = vst.msk [vmem:[%s540_s1 + $0x1d0] sm:$0xff] %vm158_vm0, %v152_v56  ;;  %185 = vst.msk [vmem:[%s540_s1 + $0xd0] sm:$0xff] %vm158_vm0, %v88_v57 }
  0xff   :  { %v153_v58 = vpop.trf.xlu1  ;;  %v89_v59 = vpop.trf.xlu0 }
 0x100   :  { %218 = vst.msk [vmem:[%s540_s1 + $0x1d8] sm:$0xff] %vm158_vm0, %v153_v58  ;;  %186 = vst.msk [vmem:[%s540_s1 + $0xd8] sm:$0xff] %vm158_vm0, %v89_v59 }
 0x103   :  { %v154_v60 = vpop.trf.xlu1  ;;  %v90_v61 = vpop.trf.xlu0 }
 0x104   :  { %219 = vst.msk [vmem:[%s540_s1 + $0x1e0] sm:$0xff] %vm158_vm0, %v154_v60  ;;  %187 = vst.msk [vmem:[%s540_s1 + $0xe0] sm:$0xff] %vm158_vm0, %v90_v61 }
 0x107   :  { %v155_v62 = vpop.trf.xlu1  ;;  %v91_v63 = vpop.trf.xlu0 }
 0x108   :  { %220 = vst.msk [vmem:[%s540_s1 + $0x1e8] sm:$0xff] %vm158_vm0, %v155_v62  ;;  %188 = vst.msk [vmem:[%s540_s1 + $0xe8] sm:$0xff] %vm158_vm0, %v91_v63 }
 0x10b   :  { %v156_v0 = vpop.trf.xlu1  ;;  %v92_v1 = vpop.trf.xlu0 }
 0x10c   :  { %221 = vst.msk [vmem:[%s540_s1 + $0x1f0] sm:$0xff] %vm158_vm0, %v156_v0  ;;  %189 = vst.msk [vmem:[%s540_s1 + $0xf0] sm:$0xff] %vm158_vm0, %v92_v1 }
 0x10f   :  { %v157_v2 = vpop.trf.xlu1  ;;  %v93_v3 = vpop.trf.xlu0 }
 0x110   :  { %222 = vst.msk [vmem:[%s540_s1 + $0x1f8] sm:$0xff] %vm158_vm0, %v157_v2  ;;  %190 = vst.msk [vmem:[%s540_s1 + $0xf8] sm:$0xff] %vm158_vm0, %v93_v3 }
 0x111   :  { %227 = vsyncpa [#allocation3], 1 }

</bundles_post_ra>
